<compile_context>
chip_gen: v7x
topology: tpu7x:2x2x1
jax: 0.10.0
libtpu: 0.0.40
codegen_flags: <defaults>
</compile_context>

<pallas_src>
import jax
import jax.numpy as jnp
from jax.experimental import pallas as pl
from jax.experimental.pallas import tpu as pltpu


def _seq_pool_kernel(x_ref, o_ref, carry_ref):
    """x_ref / o_ref: (bt, tl, ct) tile; carry_ref: (bt, 1, ct) carry row."""
    t = pl.program_id(2)

    # First sequence tile of every (batch, channel) block: the "previous row"
    # is AvgPool1d's zero left-padding.
    @pl.when(t == 0)
    def _():
        carry_ref[...] = jnp.zeros_like(carry_ref)

    x = x_ref[...]                      # (bt, tl, ct)
    tl = x.shape[1]                     # static
    prev_row = carry_ref[...]           # (bt, 1, ct): x[b, t*tl - 1, :] (or 0)

    # Shifted-previous tile: rows 1..tl-1 come from an XLU sublane roll of the
    # current tile (free slot next to the VPU/store path); row 0 is blended in
    # from the carry with a single iota/where.  This keeps the write a single
    # full-tile, sublane/lane-aligned store (no masked vst.msk partials).
    if tl > 1:
        prev = pltpu.roll(x, shift=1, axis=1)            # prev[:, i] = x[:, i-1]
        row0 = jax.lax.broadcasted_iota(jnp.int32, x.shape, 1) == 0
        prev = jnp.where(row0, prev_row, prev)
    else:
        prev = prev_row

    o_ref[...] = ((prev - x) * 0.5).astype(o_ref.dtype)

    # Carry this tile's last input row into the next sequence tile; skip the
    # dead store on the last tile (and entirely when the grid has one tile).
    @pl.when(t + 1 < pl.num_programs(2))
    def _():
        carry_ref[...] = x[:, tl - 1: tl, :]


def _is_two_core_chip():
    """True for 2-TensorCore chips (v7x); v5e/v6e (and unknown) -> False."""
    try:
        kind = jax.devices()[0].device_kind.lower()
    except Exception:
        return False
    return ("v7" in kind) or ("tpu7" in kind)


def _choose_tiles(B, L, C, itemsize, target_block_bytes, two_cores):
    """Pick (bt, ct, tl): ~target-sized, layout-aligned blocks."""
    # Packed sublane height for this dtype: 8 rows f32, 16 bf16, 32 int8/fp8.
    sublane = max(8, (8 * 4) // max(1, itemsize))

    # v7x only: if the batch axis cannot provide >= 2 parallel blocks, split
    # the (independent) channel axis so the second TensorCore gets work.
    if two_cores and B == 1 and C >= 256 and C % 256 == 0:
        ct = C // 2                      # lane-dense (multiple of 128)
    else:
        ct = C

    row_bytes = max(1, ct * itemsize)
    target_rows = max(sublane, target_block_bytes // row_bytes)
    if target_rows >= L or L <= sublane:
        tl = L
    else:
        tl = min(L, max(sublane, (int(target_rows) // sublane) * sublane))

    if tl == L:
        # Whole sequence per tile: group batch rows to amortize the ~0.35 us
        # per-grid-step overhead.
        bt = min(B, max(1, int(target_block_bytes // max(1, L * row_bytes))))
        if two_cores and B >= 2:
            # Keep >= 2 batch blocks and prefer an even block count so the two
            # TensorCores get a balanced split.  Single-TC chips keep the
            # largest bt that fits (splitting there is pure overhead).
            bt = min(bt, max(1, B // 2))
            while bt > 1 and (-(-B // bt)) % 2:
                bt -= 1
    else:
        bt = 1
    return bt, ct, tl


def sequence_pooling(x, *, target_block_bytes=None, two_cores=None):
    """x: (B, L, C) -> (B, L, C); equivalent to SequencePooling(pool_size=2)."""
    B, L, C = x.shape
    itemsize = x.dtype.itemsize
    if two_cores is None:
        two_cores = _is_two_core_chip()
    if target_block_bytes is None:
        # v7x HBM is ~2.3x faster, so use bigger blocks to amortize the fixed
        # per-step overhead; still fits comfortably in its 64 MiB VMEM.
        target_block_bytes = (8 if two_cores else 4) * 1024 * 1024

    bt, ct, tl = _choose_tiles(B, L, C, itemsize, target_block_bytes, two_cores)
    grid = (pl.cdiv(B, bt), pl.cdiv(C, ct), pl.cdiv(L, tl))

    # VMEM budget from actual usage: double-buffered in + out blocks, the
    # carry scratch, plus a few MiB of headroom for compiler-internal scratch.
    block_bytes = bt * tl * ct * itemsize
    carry_bytes = bt * ct * itemsize
    vmem_limit = min(
        64 * 1024 * 1024,
        max(16 * 1024 * 1024, 4 * block_bytes + carry_bytes + 4 * 1024 * 1024),
    )

    # TODO(synk): if production C is not a multiple of 128, pad channels to a
    # lane-dense multiple of 128 (or fold heads into C) before calling; a
    # 1-row halo input (to make the sequence axis parallel too) is omitted
    # because a 1-sublane block on a longer sequence axis violates the (8,128)
    # block constraint — the channel split covers the v7x small-batch case.
    return pl.pallas_call(
        _seq_pool_kernel,
        out_shape=jax.ShapeDtypeStruct((B, L, C), x.dtype),
        grid=grid,
        in_specs=[pl.BlockSpec((bt, tl, ct), lambda b, c, t: (b, t, c))],
        out_specs=pl.BlockSpec((bt, tl, ct), lambda b, c, t: (b, t, c)),
        scratch_shapes=[pltpu.VMEM((bt, 1, ct), x.dtype)],
        compiler_params=pltpu.CompilerParams(
            # Batch & channel axes parallel (megacore); the sequence-tile axis
            # must stay innermost + sequential because of the carry scratch.
            dimension_semantics=("parallel", "parallel", "arbitrary"),
            vmem_limit_bytes=vmem_limit,
        ),
        cost_estimate=pl.CostEstimate(
            flops=2 * B * L * C,
            transcendentals=0,
            bytes_accessed=2 * B * L * C * itemsize,
        ),
    )(x)


def _reference(x):
    # Pure-JAX reference of the PyTorch forward.
    x_prev = jnp.concatenate(
        [jnp.zeros_like(x[:, :1, :]), x[:, :-1, :]], axis=1)
    return (x_prev - x) * 0.5


if __name__ == "__main__":
    key = jax.random.PRNGKey(0)
    k1, k2, k3, k4 = jax.random.split(key, 4)

    # Small shape consistent with the module's forward: (batch, seq, hidden).
    x1 = jax.random.normal(k1, (2, 8, 32), dtype=jnp.float32)
    out1 = jax.block_until_ready(sequence_pooling(x1))
    assert out1.shape == x1.shape
    assert jnp.allclose(out1, _reference(x1), atol=1e-6, rtol=1e-6), \
        "mismatch vs reference"

    # Tiled sequence axis: carry row across tiles + a partial last tile.
    x2 = jax.random.normal(k2, (3, 36, 128), dtype=jnp.float32)
    out2 = jax.block_until_ready(sequence_pooling(x2, target_block_bytes=4096))
    assert jnp.allclose(out2, _reference(x2), atol=1e-6, rtol=1e-6), \
        "tiled mismatch vs reference"

    # Batched-block path (bt > 1, whole sequence in one tile).
    x3 = jax.random.normal(k3, (5, 16, 128), dtype=jnp.float32)
    out3 = jax.block_until_ready(sequence_pooling(x3))
    assert jnp.allclose(out3, _reference(x3), atol=1e-6, rtol=1e-6), \
        "batched-block mismatch vs reference"

    # v7x-style layout forced on any chip: B=1 -> channel-axis split (ct=128)
    # plus multiple sequence tiles; 'parallel' semantics are a no-op on 1-TC.
    x4 = jax.random.normal(k4, (1, 64, 256), dtype=jnp.float32)
    out4 = jax.block_until_ready(
        sequence_pooling(x4, target_block_bytes=16 * 1024, two_cores=True))
    assert jnp.allclose(out4, _reference(x4), atol=1e-6, rtol=1e-6), \
        "channel-split mismatch vs reference"

    print("KERNEL_OK")
</pallas_src>

<mosaic_0001>
module attributes {stable_mosaic.version = 11 : i64} {
  func.func @_seq_pool_kernel(%arg0: i32, %arg1: i32, %arg2: i32, %arg3: memref<2x8x32xf32, #tpu.memory_space<vmem>>, %arg4: memref<2x8x32xf32, #tpu.memory_space<vmem>>, %arg5: memref<2x1x32xf32, #tpu.memory_space<vmem>>) attributes {dimension_semantics = [#tpu.dimension_semantics<parallel>, #tpu.dimension_semantics<parallel>, #tpu.dimension_semantics<arbitrary>], iteration_bounds = array<i64: 1, 1, 1>, scalar_prefetch = 0 : i64, scratch_operands = 1 : i64, tpu.core_type = #tpu.core_type<tc>, window_params = [{transform_indices = @transform_0, window_bounds = array<i64: 2, 8, 32>}, {transform_indices = @transform_1, window_bounds = array<i64: 2, 8, 32>}]} {
    %c0_i32 = arith.constant 0 : i32
    %0 = arith.cmpi eq, %arg2, %c0_i32 : i32
    %1 = arith.extui %0 : i1 to i32
    %c0_i32_0 = arith.constant 0 : i32
    %2 = arith.cmpi ne, %1, %c0_i32_0 : i32
    scf.if %2 {
      %cst_13 = arith.constant 0.000000e+00 : f32
      %20 = vector.broadcast %cst_13 : f32 to vector<2x1x32xf32>
      %c0_14 = arith.constant 0 : index
      %c0_15 = arith.constant 0 : index
      %c0_16 = arith.constant 0 : index
      %21 = vector.load %arg5[%c0_14, %c0_15, %c0_16] : memref<2x1x32xf32, #tpu.memory_space<vmem>>, vector<2x1x32xf32>
      tpu.vector_store %arg5[%c0_14, %c0_15, %c0_16], %20 {strides = array<i32>} : memref<2x1x32xf32, #tpu.memory_space<vmem>>, vector<2x1x32xf32>,
    } else {
    }
    %c0 = arith.constant 0 : index
    %c0_1 = arith.constant 0 : index
    %c0_2 = arith.constant 0 : index
    %3 = vector.load %arg3[%c0, %c0_1, %c0_2] : memref<2x8x32xf32, #tpu.memory_space<vmem>>, vector<2x8x32xf32>
    %c0_3 = arith.constant 0 : index
    %c0_4 = arith.constant 0 : index
    %c0_5 = arith.constant 0 : index
    %4 = vector.load %arg5[%c0_3, %c0_4, %c0_5] : memref<2x1x32xf32, #tpu.memory_space<vmem>>, vector<2x1x32xf32>
    %c1_i32 = arith.constant 1 : i32
    %5 = tpu.dynamic_rotate %3 by %c1_i32 dim 1 : vector<2x8x32xf32>, i32 -> vector<2x8x32xf32>
    %6 = tpu.iota {dimensions = array<i32: 1>} : vector<2x8x32xi32>
    %c0_i32_6 = arith.constant 0 : i32
    %7 = vector.broadcast %c0_i32_6 : i32 to vector<2x8x32xi32>
    %8 = arith.cmpi eq, %6, %7 : vector<2x8x32xi32>
    %9 = vector.shape_cast %4 : vector<2x1x32xf32> to vector<2x1x32xf32>
    %10 = vector.broadcast %9 : vector<2x1x32xf32> to vector<2x8x32xf32>
    %11 = arith.select %8, %10, %5 : vector<2x8x32xi1>, vector<2x8x32xf32>
    %12 = arith.subf %11, %3 : vector<2x8x32xf32>
    %cst = arith.constant 5.000000e-01 : f32
    %13 = vector.broadcast %cst : f32 to vector<2x8x32xf32>
    %14 = arith.mulf %12, %13 : vector<2x8x32xf32>
    %c0_7 = arith.constant 0 : index
    %c0_8 = arith.constant 0 : index
    %c0_9 = arith.constant 0 : index
    %15 = vector.load %arg4[%c0_7, %c0_8, %c0_9] : memref<2x8x32xf32, #tpu.memory_space<vmem>>, vector<2x8x32xf32>
    tpu.vector_store %arg4[%c0_7, %c0_8, %c0_9], %14 {strides = array<i32>} : memref<2x8x32xf32, #tpu.memory_space<vmem>>, vector<2x8x32xf32>,
    %c1_i32_10 = arith.constant 1 : i32
    %16 = arith.addi %arg2, %c1_i32_10 : i32
    %c1_i32_11 = arith.constant 1 : i32
    %17 = arith.cmpi slt, %16, %c1_i32_11 : i32
    %18 = arith.extui %17 : i1 to i32
    %c0_i32_12 = arith.constant 0 : i32
    %19 = arith.cmpi ne, %18, %c0_i32_12 : i32
    scf.if %19 {
      %20 = vector.extract_strided_slice %3 {offsets = [0, 7, 0], sizes = [2, 1, 32], strides = [1, 1, 1]} : vector<2x8x32xf32> to vector<2x1x32xf32>
      %c0_13 = arith.constant 0 : index
      %c0_14 = arith.constant 0 : index
      %c0_15 = arith.constant 0 : index
      %21 = vector.load %arg5[%c0_13, %c0_14, %c0_15] : memref<2x1x32xf32, #tpu.memory_space<vmem>>, vector<2x1x32xf32>
      tpu.vector_store %arg5[%c0_13, %c0_14, %c0_15], %20 {strides = array<i32>} : memref<2x1x32xf32, #tpu.memory_space<vmem>>, vector<2x1x32xf32>,
    } else {
    }
    return
  }
  func.func @transform_0(%arg0: i32, %arg1: i32, %arg2: i32) -> (i32, i32, i32) {
    %c0_i32 = arith.constant 0 : i32
    return %arg0, %arg2, %arg1 : i32, i32, i32
  }
  func.func @transform_1(%arg0: i32, %arg1: i32, %arg2: i32) -> (i32, i32, i32) {
    %c0_i32 = arith.constant 0 : i32
    return %arg0, %arg2, %arg1 : i32, i32, i32
  }
}

</mosaic_0001>

<bundles_post_ra>
// kernel: tpu_custom_call.1
= control target key start
LH: loop header
LB: loop body
LE: loop exit
PB: predicated region body
PF: predicated region fallthrough
CT: control target
= control target key end

     0   :  { %6 = vsyncpa [#allocation4], 0  ;;  %s185_s0 = inlined_call_operand.hbm [shape: f32[2,8,32], index: 0, kind: input, shape index: {}]   ;;  %s186_s1 = inlined_call_operand.hbm [shape: f32[2,8,32], index: 1, kind: output, shape index: {}]  }
   0x1   :  { %7 = vsyncpa [#allocation5], 0  ;;  %s140_s6 = smov [#allocation3]   ;;  %s92_s10 = scalar_lea.hbm %s185_s0, 256 }
   0x2   :  { %s13_s7 = sshll.u32 %s140_s6, 4  ;;  %p93_p0 = scmp.ne.s32.totalorder %s185_s0, %s92_s10  ;;  %s14_s7 = int_to_ptr.vmem [resolvable:$true] %s13_s7 }
   0x3   :  { %p96_p1 = scmp.lt.u32.totalorder %s92_s10, %s185_s0 }
   0x5   :  { %p98_p2 = pnand %p96_p1, %p93_p0 }
   0x7   :  { %101 = shalt.err (!%p98_p2)
}
   0x8   :  { %s102_s15 = scalar_lea.vmem %s14_s7, 256  ;;  %p107_p4 = scmp.lt.s32.totalorder %s14_s7, %s14_s7 }
   0x9   :  { %p103_p3 = scmp.ne.s32.totalorder %s14_s7, %s102_s15  ;;  %p108_p5 = scmp.lt.s32.totalorder %s102_s15, %s102_s15 }
   0xb   :  { %p109_p6 = por %p108_p5, %p107_p4 }
   0xd   :  { %p110_p7 = pnand %p109_p6, %p103_p3 }
   0xf   :  { %113 = shalt.err (!%p110_p7)
}
  0x10   :  { %s141_s16 = smov 128   ;;  %s142_s17 = smov 8  }
  0x11   :  { %19 = dma.hbm_to_vmem [thread:$0]  %s185_s0, 256, %s14_s7, [#allocation4], %s141_s16, %s141_s16, %s142_s17  }
  0x12   :  { %136 = dma.done.wait [#allocation4], 256  }
  0x13   :  { %137 = vsyncadd [#allocation4], 4294967040  ;;  %vm27_vm0 = vcmask 253952   ;;  %v36_v0 = vlaneseq  ;;  %v143_v1 = vmov 0.0   ;;  %v30_v3 = vld [vmem:[#allocation3] sm:$0xff]  ;;  %v31_v4 = vld [vmem:[#allocation3 + $0x8] sm:$0xff] }
  0x14   :  { %28 = vst.msk [vmem:[#allocation2] sm:$0x1] %vm27_vm0, %v143_v1  ;;  %29 = vst.msk [vmem:[#allocation2 + $0x1] sm:$0x1] %vm27_vm0, %v143_v1  ;;  %v34_v6 = vrot.slane %v30_v3, 7  ;;  %v35_v8 = vrot.slane %v31_v4, 7 }
  0x15   :  { %v37_v2 = vshrl.u32 %v36_v0, 7  ;;  %s144_s20 = smov [#allocation6]   ;;  %vm57_vm2 = vcmask 261120  }
  0x16   :  { %s73_s21 = sshll.u32 %s144_s20, 4  ;;  %s74_s21 = int_to_ptr.vmem [resolvable:$true] %s73_s21 }
  0x17   :  { %vm38_vm1 = vcmp.eq.s32.totalorder %v37_v2, 0  ;;  %s114_s0 = scalar_lea.vmem %s74_s21, 256  ;;  %p119_p9 = scmp.lt.s32.totalorder %s74_s21, %s74_s21 }
  0x18   :  { %p115_p8 = scmp.ne.s32.totalorder %s74_s21, %s114_s0  ;;  %p120_p10 = scmp.lt.s32.totalorder %s114_s0, %s114_s0 }
  0x1a   :  { %p121_p11 = por %p120_p10, %p119_p9 }
  0x1b   :  { %v85_v5 = vld [vmem:[#allocation2] ss:$0 sm:$0xff]  ;;  %v86_v7 = vld [vmem:[#allocation2 + $0x1] ss:$0 sm:$0xff] }
  0x1c   :  { %v51_v9 = vsel %vm38_vm1, %v85_v5, %v34_v6  ;;  %v52_v10 = vsel %vm38_vm1, %v86_v7, %v35_v8  ;;  %p122_p12 = pnand %p121_p11, %p115_p8 }
  0x1d   :  { %v53_v11 = vsub.f32 %v51_v9, %v30_v3  ;;  %v54_v12 = vsub.f32 %v52_v10, %v31_v4 }
  0x1f   :  { %v55_v13 = vmul.f32 0.5, %v53_v11  ;;  %v56_v14 = vmul.f32 0.5, %v54_v12 }
  0x21   :  { %58 = vst.msk [vmem:[#allocation6] sm:$0xff] %vm57_vm2, %v55_v13  ;;  %59 = vst.msk [vmem:[#allocation6 + $0x8] sm:$0xff] %vm57_vm2, %v56_v14 }
  0x22   :  { %125 = shalt.err (!%p122_p12)
}
  0x23   :  { %s126_s24 = scalar_lea.hbm %s186_s1, 256 }
  0x24   :  { %p127_p13 = scmp.ne.s32.totalorder %s186_s1, %s126_s24  ;;  %p130_p0 = scmp.lt.u32.totalorder %s126_s24, %s186_s1 }
  0x26   :  { %p132_p1 = pnand %p130_p0, %p127_p13 }
  0x28   :  { %135 = shalt.err (!%p132_p1)
}
  0x29   :  { %79 = dma.vmem_to_hbm [thread:$0]  %s74_s21, 256, %s186_s1, [#allocation5], %s141_s16, %s141_s16, %s142_s17  }
  0x2a   :  { %138 = dma.done.wait [#allocation5], 256  }
  0x2b   :  { %139 = vsyncadd [#allocation5], 4294967040 }
  0x2c   :  { %83 = vsyncpa [#allocation4], 1 }
  0x2d   :  { %84 = vsyncpa [#allocation5], 1 }

</bundles_post_ra>
